<compile_context>
chip_gen: v7x
topology: tpu7x:2x2x1
jax: 0.10.0
libtpu: 0.0.40
codegen_flags: <defaults>
</compile_context>

<pallas_src>
import jax
import jax.numpy as jnp
import numpy as np
from jax.experimental import pallas as pl
from jax.experimental.pallas import tpu as pltpu


def _round_up(x, m):
    return (x + m - 1) // m * m


def _pick_tile_m(M):
    # Prefer MXU-height row tiles (256 feeds the v6e/v7x 256-wide MXU; 128 is
    # enough for v5e's 128x128) and 512 once M is big (better HBM roofline),
    # while always keeping >= 4 grid steps so each v7x TensorCore gets >= 2
    # iterations and double-buffering has something to overlap.
    for t in (512, 256, 128, 64, 32):
        if M >= 4 * t:
            return t
    return 32


# ----------------------------------------------------------------------------
# Pallas kernel: one row-tile of the fused (conv-as-matmul + bias + ReLU)
# ----------------------------------------------------------------------------
def _fused_conv_relu_kernel(p_ref, w_ref, b_ref, o_ref):
    # p_ref : (tile_m, K_pad)   im2col patch rows (f32 or bf16)
    # w_ref : (K_pad, C_pad)    conv weights, zero-padded (f32 or bf16)
    # b_ref : (1, C_pad)        conv bias, zero-padded (f32)
    # o_ref : (tile_m, C_pad)   output patch features (f32 or bf16)
    acc = jnp.dot(p_ref[...], w_ref[...], preferred_element_type=jnp.float32)
    o_ref[...] = jnp.maximum(acc + b_ref[...], 0.0).astype(o_ref.dtype)


def visual_extractor_forward(images, conv_w, conv_b, *, kh=2, kw=2, stride=2,
                             tile_m=None, use_bf16=None, out_bf16=False):
    """images: (B, Cin, H, W) NCHW float32.
    Returns (patch_feats (B, HW_out, C), avg_feats (B, C))."""
    B, Cin, H, W = images.shape
    Cout = conv_w.shape[0]
    Ho, Wo = H // stride, W // stride
    HW = Ho * Wo
    K = Cin * kh * kw
    M = B * HW

    if use_bf16 is None:
        # bf16 MXU inputs by default at real (DenseNet-scale) contractions;
        # all of v5e/v6e/v7x have bf16-native MXUs and f32 matmul costs a
        # multi-pass decomposition plus 2x the HBM/VMEM bytes.  Tiny K/C stays
        # f32 (precision is free there and the self-test is tight).
        use_bf16 = (K >= 256) or (Cout >= 256)
    in_dtype = jnp.bfloat16 if use_bf16 else jnp.float32
    out_dtype = jnp.bfloat16 if out_bf16 else jnp.float32

    # --- im2col as a pure reshape/transpose (stride == kernel, no padding) ---
    # (B, Cin, Ho, kh, Wo, kw) -> (B, Ho, Wo, Cin, kh, kw) -> (B*HW, K)
    patches = images.reshape(B, Cin, Ho, kh, Wo, kw)
    patches = patches.transpose(0, 2, 4, 1, 3, 5).reshape(M, K)
    w_mat = conv_w.reshape(Cout, K).T            # (K, Cout)

    # Cast BEFORE padding so the (possibly materialized) im2col producer and
    # the zero pads carry half the bytes on the bf16 path.
    patches = patches.astype(in_dtype)
    w_mat = w_mat.astype(in_dtype)

    # --- lane/sublane-dense padding -----------------------------------------
    #  * C_pad -> multiple of 128: unmasked lane-dense vst output stores.
    #  * K_pad -> multiple of 128 at real sizes, but only a sublane multiple
    #    when K << 128 (the block covers the full K extent, which satisfies
    #    the (8,128) rule; padding 12 -> 128 would ship ~10x pure zeros).
    sublane = 16 if use_bf16 else 8
    K_pad = _round_up(K, 128) if K >= 128 else _round_up(K, sublane)
    C_pad = _round_up(Cout, 128)

    if tile_m is None:
        tile_m = _pick_tile_m(M)
    steps = -(-M // tile_m)
    if steps > 1 and steps % 2:
        steps += 1           # even step count -> balanced v7x megacore split
    M_pad = steps * tile_m

    patches = jnp.pad(patches, ((0, M_pad - M), (0, K_pad - K)))
    w_mat = jnp.pad(w_mat, ((0, K_pad - K), (0, C_pad - Cout)))
    b_mat = jnp.pad(conv_b.reshape(1, Cout).astype(jnp.float32),
                    ((0, 0), (0, C_pad - Cout)))

    # --- VMEM budget ----------------------------------------------------------
    # 2x (double-buffered) input/output row tiles + 1x (single-buffered)
    # resident weight slab + bias.  Raise the scoped limit with headroom
    # (v5e default is only 16 MiB); cap at v7x's 64 MiB physical VMEM.
    in_bytes = 2 if use_bf16 else 4
    out_bytes = 2 if out_bf16 else 4
    vmem_bytes = (2 * tile_m * K_pad * in_bytes       # patch row tiles
                  + K_pad * C_pad * in_bytes          # weights (single buffer)
                  + 8 * C_pad * 4                     # bias (sublane-padded)
                  + 2 * tile_m * C_pad * out_bytes)   # output row tiles
    vmem_limit = int(min(64 * 1024 * 1024,
                         max(32 * 1024 * 1024, 2 * vmem_bytes + (4 << 20))))

    out = pl.pallas_call(
        _fused_conv_relu_kernel,
        out_shape=jax.ShapeDtypeStruct((M_pad, C_pad), out_dtype),
        grid=(steps,),
        in_specs=[
            pl.BlockSpec((tile_m, K_pad), lambda i: (i, 0)),   # streamed rows
            # Constant index_map -> single-buffer the resident weight slab and
            # bias; double-buffering them buys nothing and burns VMEM headroom
            # that the row tiles want.
            pl.BlockSpec((K_pad, C_pad), lambda i: (0, 0),
                         pipeline_mode=pl.Buffered(1)),
            pl.BlockSpec((1, C_pad), lambda i: (0, 0),
                         pipeline_mode=pl.Buffered(1)),
        ],
        out_specs=pl.BlockSpec((tile_m, C_pad), lambda i: (i, 0)),
        compiler_params=pltpu.CompilerParams(
            dimension_semantics=("parallel",),
            vmem_limit_bytes=vmem_limit,
            # Let XLA fuse the im2col reshape/transpose/pad producer into the
            # pallas_call input path instead of a full HBM round trip.
            allow_input_fusion=[True, False, False],
        ),
    )(patches, w_mat, b_mat)

    # NOTE: padded rows/cols of `out` hold ReLU(bias), not zeros — they must
    # be sliced off here before anything consumes the result.
    patch_feats = out[:M, :Cout].reshape(B, HW, Cout)
    # AvgPool2d(7, stride=1) on a 7x7 map == mean over all HW positions;
    # done in the wrapper (a per-step (1,1,C) kernel output is pure overhead).
    # Accumulate the mean in f32 even when patch_feats is bf16.
    avg_feats = jnp.mean(patch_feats.astype(jnp.float32),
                         axis=1).astype(patch_feats.dtype)
    return patch_feats, avg_feats


if __name__ == "__main__":
    # Small shapes: DenseNet121 on 224x224 yields (B, 1024, 7, 7); here a
    # 14x14 input and a stride-2 stand-in conv give the same 7x7 spatial map.
    B, Cin, H, W = 2, 3, 14, 14
    Cout = 32

    key = jax.random.PRNGKey(0)
    k_img, k_w, k_b = jax.random.split(key, 3)
    images = jax.random.normal(k_img, (B, Cin, H, W), dtype=jnp.float32)
    conv_w = 0.1 * jax.random.normal(k_w, (Cout, Cin, 2, 2), dtype=jnp.float32)
    conv_b = 0.01 * jax.random.normal(k_b, (Cout,), dtype=jnp.float32)

    # Pure-numpy float64 reference (no XLA-default-precision slop).
    imgs = np.asarray(images, dtype=np.float64)
    p = imgs.reshape(B, Cin, 7, 2, 7, 2).transpose(0, 2, 4, 1, 3, 5)
    p = p.reshape(B, 49, Cin * 4)
    wm = np.asarray(conv_w, dtype=np.float64).reshape(Cout, -1).T
    ref = np.maximum(p @ wm + np.asarray(conv_b, dtype=np.float64), 0.0)

    # --- default path (f32 at these tiny K/C; bf16 auto-enables at scale) ---
    fwd = jax.jit(visual_extractor_forward)
    patch_feats, avg_feats = fwd(images, conv_w, conv_b)
    jax.block_until_ready((patch_feats, avg_feats))

    # Shape contract of the PyTorch forward: (B, HW, C) and (B, C)
    assert patch_feats.shape == (B, 49, Cout), patch_feats.shape
    assert avg_feats.shape == (B, Cout), avg_feats.shape
    np.testing.assert_allclose(np.asarray(patch_feats), ref,
                               rtol=1e-5, atol=1e-5)
    np.testing.assert_allclose(np.asarray(avg_feats), ref.mean(axis=1),
                               rtol=1e-5, atol=1e-5)

    # --- bf16 MXU-input + bf16 writeback path (what real shapes default to) --
    fwd_bf16 = jax.jit(lambda im, w, b: visual_extractor_forward(
        im, w, b, use_bf16=True, out_bf16=True))
    pf16, af16 = fwd_bf16(images, conv_w, conv_b)
    jax.block_until_ready((pf16, af16))
    assert pf16.shape == (B, 49, Cout) and af16.shape == (B, Cout)
    np.testing.assert_allclose(np.asarray(pf16, dtype=np.float64), ref,
                               rtol=2e-2, atol=2e-2)
    np.testing.assert_allclose(np.asarray(af16, dtype=np.float64),
                               ref.mean(axis=1), rtol=2e-2, atol=2e-2)

    print("KERNEL_OK")
</pallas_src>

<mosaic_0001>
module attributes {stable_mosaic.version = 11 : i64} {
  func.func @_fused_conv_relu_kernel(%arg0: i32, %arg1: memref<32x16xf32, #tpu.memory_space<vmem>>, %arg2: memref<16x128xf32, #tpu.memory_space<vmem>>, %arg3: memref<1x128xf32, #tpu.memory_space<vmem>>, %arg4: memref<32x128xf32, #tpu.memory_space<vmem>>) attributes {dimension_semantics = [#tpu.dimension_semantics<parallel>], iteration_bounds = array<i64: 4>, scalar_prefetch = 0 : i64, scratch_operands = 0 : i64, tpu.core_type = #tpu.core_type<tc>, window_params = [{transform_indices = @transform_0, window_bounds = array<i64: 32, 16>}, {pipeline_mode = #tpu.pipeline_mode<synchronous>, transform_indices = @transform_1, window_bounds = array<i64: 16, 128>}, {pipeline_mode = #tpu.pipeline_mode<synchronous>, transform_indices = @transform_2, window_bounds = array<i64: 1, 128>}, {transform_indices = @transform_3, window_bounds = array<i64: 32, 128>}]} {
    %c0 = arith.constant 0 : index
    %c0_0 = arith.constant 0 : index
    %0 = vector.load %arg1[%c0, %c0_0] : memref<32x16xf32, #tpu.memory_space<vmem>>, vector<32x16xf32>
    %c0_1 = arith.constant 0 : index
    %c0_2 = arith.constant 0 : index
    %1 = vector.load %arg2[%c0_1, %c0_2] : memref<16x128xf32, #tpu.memory_space<vmem>>, vector<16x128xf32>
    %cst = arith.constant dense<0.000000e+00> : vector<32x128xf32>
    %2 = tpu.matmul %0, %1, %cst {dimension_numbers = #tpu.dot_dimension_numbers<[1], [0], [0], [1], [0, 0, 1, 1], [], []>} : vector<32x16xf32>, vector<16x128xf32>, vector<32x128xf32> -> vector<32x128xf32>
    %c0_3 = arith.constant 0 : index
    %c0_4 = arith.constant 0 : index
    %3 = vector.load %arg3[%c0_3, %c0_4] : memref<1x128xf32, #tpu.memory_space<vmem>>, vector<1x128xf32>
    %4 = vector.broadcast %3 : vector<1x128xf32> to vector<32x128xf32>
    %5 = arith.addf %2, %4 : vector<32x128xf32>
    %cst_5 = arith.constant 0.000000e+00 : f32
    %6 = vector.broadcast %cst_5 : f32 to vector<32x128xf32>
    %7 = arith.maximumf %5, %6 : vector<32x128xf32>
    %c0_6 = arith.constant 0 : index
    %c0_7 = arith.constant 0 : index
    %8 = vector.load %arg4[%c0_6, %c0_7] : memref<32x128xf32, #tpu.memory_space<vmem>>, vector<32x128xf32>
    tpu.vector_store %arg4[%c0_6, %c0_7], %7 {strides = array<i32>} : memref<32x128xf32, #tpu.memory_space<vmem>>, vector<32x128xf32>,
    return
  }
  func.func @transform_0(%arg0: i32) -> (i32, i32) {
    %c0_i32 = arith.constant 0 : i32
    %c0_i32_0 = arith.constant 0 : i32
    return %arg0, %c0_i32 : i32, i32
  }
  func.func @transform_1(%arg0: i32) -> (i32, i32) {
    %c0_i32 = arith.constant 0 : i32
    %c0_i32_0 = arith.constant 0 : i32
    %c0_i32_1 = arith.constant 0 : i32
    return %c0_i32, %c0_i32_0 : i32, i32
  }
  func.func @transform_2(%arg0: i32) -> (i32, i32) {
    %c0_i32 = arith.constant 0 : i32
    %c0_i32_0 = arith.constant 0 : i32
    %c0_i32_1 = arith.constant 0 : i32
    return %c0_i32, %c0_i32_0 : i32, i32
  }
  func.func @transform_3(%arg0: i32) -> (i32, i32) {
    %c0_i32 = arith.constant 0 : i32
    %c0_i32_0 = arith.constant 0 : i32
    return %arg0, %c0_i32 : i32, i32
  }
}

</mosaic_0001>

<bundles_post_ra>
// kernel: visual_extractor_forward.2
= control target key start
LH: loop header
LB: loop body
LE: loop exit
PB: predicated region body
PF: predicated region fallthrough
CT: control target
= control target key end

     0   :  { %s576_s17 = smov 0   ;;  %s656_s0 = inlined_call_operand.vmem [shape: f32[16,128], index: 0, kind: input, shape index: {}]   ;;  %s657_s1 = inlined_call_operand.vmem [shape: f32[1,128], index: 1, kind: input, shape index: {}]   ;;  %s658_s2 = inlined_call_operand.vmem [shape: f32[98,12], index: 2, kind: input, shape index: {}]   ;;  %s659_s3 = inlined_call_operand.<no memory space> [shape: f32[], index: 3, kind: input, shape index: {}]   ;;  %s660_s4 = inlined_call_operand.vmem [shape: f32[128,128], index: 4, kind: output, shape index: {}]  }
   0x1   :  { %v574_v0 = vstv %s659_s3 }
   0x2 LB: > { %s474_s18 = sadd.s32 4294967295, %s544_s17   ;;  %p478_p0 = scmp.ge.s32.totalorder %s544_s17, 1  ;;  %s544_s17 = sphi %s576_s17, %s15_s17  }
   0x3   : > { %p148_p1 = scmp.lt.s32.totalorder %s544_s17, 5 }
   0x5   : > { %p149_p2 = pnand %p478_p0, %p148_p1 }
   0x6   : > { %v303_v1 = vld [vmem:[%s656_s0] sm:$0xff] (!%p149_p2)  ;;  %v304_v2 = vld [vmem:[%s656_s0 + $0x8] sm:$0xff] (!%p149_p2)  ;;  %s590_s22 = sshll.u32 (!%p149_p2), %s474_s18, 2  ;;  %s592_s23 = sshll.u32 (!%p149_p2), %s474_s18, 5  ;;  %v205_v3 = vlaneseq (!%p149_p2)  ;;  %vm312_vm3 = vcmask (!%p149_p2), 130048  }
   0x7   : > { %152 = sbr.rel (%p149_p2) target bundleno = 244 (0xf4), region = 32  ;;  %v524_v4 = vpack.c.bf16 (!%p149_p2), %v304_v2, %v303_v1  ;;  %p181_p3 = scmp.lt.s32.totalorder (!%p149_p2), %s590_s22, 12  ;;  %v207_v5 = vstv (!%p149_p2), %s592_s23  ;;  %v491_v36 = vld [vmem:[%s657_s1] ss:$0 sm:$0xff] (!%p149_p2) }
   0x8   : > { %s196_s24 = ssub.s32 (!%p149_p2), 12, %s590_s22  ;;  %v206_v7 = vshrl.u32 (!%p149_p2), %v205_v3, 7  ;;  %s246_s26 = sadd.s32 (!%p149_p2), 2, %s590_s22  ;;  %v212_v8 = vand.u32 (!%p149_p2), 127, %v205_v3 }
   0x9   : > { %p597_p4 = scmp.lt.s32.totalorder (!%p149_p2), %s196_s24, 0  ;;  %v201_v6 = vstv (!%p149_p2), %s196_s24  ;;  %525 = vmatprep.subr.bf16.mxu0 (!%p149_p2), %v524_v4  ;;  %528 = vmatprep.subr.bf16.mxu1 (!%p149_p2), %v524_v4  ;;  %s247_s30 = ssub.s32 (!%p149_p2), 12, %s246_s26 }
   0xa   : > { %527 = vmatpush3.bf16.msra.mxu0 (!%p149_p2), %v524_v4  ;;  %529 = vmatpush3.bf16.msra.mxu1 (!%p149_p2), %v524_v4  ;;  %v208_v9 = vadd.s32 (!%p149_p2), %v207_v5, %v206_v7  ;;  %vm202_vm0 = vcmp.lt.s32.totalorder (!%p149_p2), %v201_v6, 0  ;;  %p248_p5 = scmp.lt.s32.totalorder (!%p149_p2), %s247_s30, 0  ;;  %v253_v10 = vstv (!%p149_p2), %s247_s30  ;;  %vm214_vm2 = vcmp.lt.s32.totalorder (!%p149_p2), %v212_v8, 12  ;;  %s502_s8 = sadd.s32 (!%p149_p2), 16, %s592_s23 }
   0xb   : > { %s219_s9 = sadd.s32 (!%p149_p2), 1, %s590_s22  ;;  %vm614_vm4 = vcmp.lt.s32.totalorder (!%p149_p2), %v253_v10, 0  ;;  %v260_v14 = vstv (!%p149_p2), %s502_s8  ;;  %s500_s12 = sadd.s32 (!%p149_p2), 8, %s592_s23 }
   0xc   : > { %vm209_vm1 = vcmp.lt.s32.totalorder (!%p149_p2), %v208_v9, 98  ;;  %v261_v16 = vadd.s32 (!%p149_p2), %v260_v14, %v206_v7  ;;  %s220_s11 = ssub.s32 (!%p149_p2), 12, %s219_s9  ;;  %v233_v20 = vstv (!%p149_p2), %s500_s12  ;;  %s273_s13 = sadd.s32 (!%p149_p2), 3, %s590_s22 }
   0xd   : > { %p221_p6 = scmp.lt.s32.totalorder (!%p149_p2), %s220_s11, 0  ;;  %v226_v19 = vstv (!%p149_p2), %s220_s11  ;;  %v234_v22 = vadd.s32 (!%p149_p2), %v233_v20, %v206_v7  ;;  %s274_s14 = ssub.s32 (!%p149_p2), 12, %s273_s13 }
   0xe   : > { %s182_s27 = scalar_select %p181_p3, %s590_s22, 12  ;;  %vm262_vm5 = vcmp.lt.s32.totalorder %v261_v16, 98  ;;  %vm227_vm6 = vcmp.lt.s32.totalorder %v226_v19, 0  ;;  %v280_v24 = vstv %s274_s14 }
   0xf   : > { %s198_s28 = scalar_select %p597_p4, 0, 255  ;;  %vm235_vm7 = vcmp.lt.s32.totalorder %v234_v22, 98  ;;  %vm281_vm8 = vcmp.lt.s32.totalorder %v280_v24, 0 }
  0x10   : > { %s480_s29 = sshll.u32 %s182_s27, 3  ;;  %s504_s15 = sadd.s32 24, %s592_s23 }
  0x11   : > { %s608_s7 = scalar_lea.vmem %s658_s2, %s480_s29  ;;  %v287_v25 = vstv %s504_s15  ;;  %p275_p7 = scmp.lt.s32.totalorder %s274_s14, 0 }
  0x12   : > { %v199_v11 = vld [vmem:[%s608_s7] sm:%s198_s28]  ;;  %s249_s10 = scalar_select %p248_p5, 0, 255  ;;  %v288_v27 = vadd.s32 %v287_v25, %v206_v7 }
  0x13   : > { %v203_v12 = vsel %vm202_vm0, %v574_v0, %v199_v11  ;;  %s222_s16 = scalar_select %p221_p6, 0, 255 }
  0x14   : > { %v210_v15 = vsel %vm209_vm1, %v203_v12, %v574_v0  ;;  %v487_v18 = vld [vmem:[%s608_s7 + $0x10] sm:%s249_s10]  ;;  %s276_s18 = scalar_select %p275_p7, 0, 255  ;;  %vm289_vm9 = vcmp.lt.s32.totalorder %v288_v27, 98 }
  0x15   : > { %v215_v17 = vsel %vm214_vm2, %v210_v15, %v574_v0  ;;  %v255_v21 = vsel %vm614_vm4, %v574_v0, %v487_v18  ;;  %v485_v28 = vld [vmem:[%s608_s7 + $0x8] sm:%s222_s16]  ;;  %p191_p8 = scmp.lt.s32.totalorder %s590_s22, 15 }
  0x16   : > { %518 = vmatprep.mubr.msk.f32.mxu0 %vm312_vm3, %v215_v17  ;;  %v263_v23 = vsel %vm262_vm5, %v255_v21, %v574_v0  ;;  %v228_v29 = vsel %vm227_vm6, %v574_v0, %v485_v28  ;;  %v489_v32 = vld [vmem:[%s608_s7 + $0x18] sm:%s276_s18] }
  0x17   : > { %v268_v26 = vsel %vm214_vm2, %v263_v23, %v574_v0  ;;  %v236_v30 = vsel %vm235_vm7, %v228_v29, %v574_v0  ;;  %v282_v33 = vsel %vm281_vm8, %v574_v0, %v489_v32  ;;  %s665_s22 = smov (!%p191_p8, %s590_s22), 15 }
  0x18   : > { %521 = vmatprep.mubr.msk.f32.mxu1 %vm312_vm3, %v268_v26  ;;  %v241_v31 = vsel %vm214_vm2, %v236_v30, %v574_v0  ;;  %v290_v34 = vsel %vm289_vm9, %v282_v33, %v574_v0  ;;  %s483_s3 = sshll.u32 %s665_s22, 3 }
  0x19   : > { %519 = vmatmul.mubr.msk.f32.vlgmr.msra.gmra.mrb[0].mxu0 %vm312_vm3, %v241_v31  ;;  %v295_v35 = vsel %vm214_vm2, %v290_v34, %v574_v0  ;;  %s194_s24 = scalar_lea.vmem %s660_s4, %s483_s3 }
  0x1a   : > { %522 = vmatmul.mubr.msk.f32.vlgmr.msra.gmra.mrb[0].mxu1 %vm312_vm3, %v295_v35 }
  0xec   : > { %v520_v37 = vpop.f32.mrb[0].mxu0 }
  0xed   : > { %v397_v38 = vadd.f32 %v520_v37, %v491_v36  ;;  %v391_v39 = vpop.f32.mrb[1].mxu0  ;;  %v523_v42 = vpop.f32.mrb[0].mxu1 }
  0xee   : > { %v392_v40 = vadd.f32 %v491_v36, %v391_v39  ;;  %v407_v43 = vadd.f32 %v523_v42, %v491_v36  ;;  %v401_v45 = vpop.f32.mrb[1].mxu1 }
  0xef   : > { %v411_v41 = vmax.f32 %v397_v38, 0.0  ;;  %v402_v46 = vadd.f32 %v491_v36, %v401_v45 }
  0xf0   : > { %v410_v44 = vmax.f32 %v392_v40, 0.0  ;;  %v413_v47 = vmax.f32 %v407_v43, 0.0 }
  0xf1   : > { %415 = vst [vmem:[%s194_s24 + $0x8] sm:$0xff] %v411_v41  ;;  %v412_v48 = vmax.f32 %v402_v46, 0.0 }
  0xf2   : > { %414 = vst [vmem:[%s194_s24] sm:$0xff] %v410_v44  ;;  %417 = vst [vmem:[%s194_s24 + $0x18] sm:$0xff] %v413_v47 }
  0xf3   : > { %416 = vst [vmem:[%s194_s24 + $0x10] sm:$0xff] %v412_v48 }
  0xf4 PF: > { %s15_s17 = sadd.s32 1, %s544_s17  }
  0xf5   : > { %p12_p9 = scmp.ge.s32.totalorder %s15_s17, 6  }
  0xf7   :  { %14 = sbr.rel (!%p12_p9) target bundleno = 2 (0x2), region = 68 }

</bundles_post_ra>
